<compile_context>
chip_gen: v5e
topology: v5e:2x2
jax: 0.10.0
libtpu: 0.0.40
codegen_flags: <defaults>
</compile_context>

<pallas_src>
import functools

import jax
import jax.numpy as jnp
import numpy as np
from jax.experimental import pallas as pl
from jax.experimental.pallas import tpu as pltpu


def _mse_sum_kernel(y_true_ref, y_pred_ref, w_ref, psum_ref, acc_ref,
                    *, ignore_label, inv_c):
    """Squared error -> channel mean -> weighting -> per-batch running sum."""
    n = pl.program_id(1)

    @pl.when(n == 0)
    def _():
        acc_ref[...] = jnp.zeros_like(acc_ref)

    yt = y_true_ref[0].astype(jnp.float32)    # (C, TN)
    yp = y_pred_ref[0].astype(jnp.float32)    # (C, TN)
    w = w_ref[0].astype(jnp.float32)          # (1, TN)

    diff = yt - yp
    sq = diff * diff
    if ignore_label is not None:
        # Matches `y_pred[y_true == ignore_label] = ignore_label` in the spec:
        # those elements' squared error becomes exactly 0 (they still count in
        # the channel mean and the final mean denominator).
        sq = jnp.where(yt == jnp.float32(ignore_label), 0.0, sq)

    per_pixel = jnp.sum(sq, axis=0, keepdims=True) * inv_c   # (1, TN) channel mean
    weighted = per_pixel * w

    acc_ref[...] += jnp.sum(weighted, keepdims=True)          # (1, 1)

    # Write the per-batch partial sum once, on the last pixel tile.
    @pl.when(n == pl.num_programs(1) - 1)
    def _():
        psum_ref[0] = acc_ref[...]


def _mse_pixel_kernel(y_true_ref, y_pred_ref, w_ref, pix_ref,
                      *, ignore_label, inv_c):
    """Per-pixel weighted squared error (only used on the top-k path)."""
    yt = y_true_ref[0].astype(jnp.float32)    # (C, TN)
    yp = y_pred_ref[0].astype(jnp.float32)    # (C, TN)
    w = w_ref[0].astype(jnp.float32)          # (1, TN)

    diff = yt - yp
    sq = diff * diff
    if ignore_label is not None:
        sq = jnp.where(yt == jnp.float32(ignore_label), 0.0, sq)

    per_pixel = jnp.sum(sq, axis=0, keepdims=True) * inv_c
    pix_ref[0] = (per_pixel * w).astype(pix_ref.dtype)


def _pick_lane_tile(n, c, itemsize, cap_bytes=8 << 20):
    """Largest lane tile dividing N that is a multiple of 128 (or == N) and
    keeps the double-buffered (C, tn) input tiles comfortably inside VMEM
    (re-derived from C and dtype so large-C / v7x configs don't overshoot)."""
    cap = max(128, cap_bytes // (4 * max(c, 1) * max(itemsize, 1)))
    cap = (cap // 128) * 128
    if n <= cap:
        return n
    for t in range(cap, 127, -128):
        if n % t == 0:
            return t
    return n  # no 128-multiple divisor: the full row is the only legal block


def mse_topk_loss(y_true, y_pred, weights, *, ignore_label=None,
                  top_k_percent_pixels=1.0, weight=1.0, tn=None):
    """Pallas implementation of MSELoss.forward (returns a scalar)."""
    assert y_pred.ndim in (3, 4), "Input tensors must have rank 3 or 4."
    assert y_true.shape == y_pred.shape

    if y_pred.ndim == 4:
        B, C, H, W = y_pred.shape
        N = H * W
    else:
        B, H, W = y_pred.shape
        C, N = 1, H * W

    # Keep native dtypes in HBM (no wrapper f32 cast); kernel upcasts in VMEM.
    yt = jnp.asarray(y_true).reshape(B, C, N)
    yp = jnp.asarray(y_pred).reshape(B, C, N)
    assert weights.size == B * N, "weights must broadcast over the reduced loss"
    w = jnp.asarray(weights).reshape(B, 1, N)

    if tn is None:
        itemsize = max(jnp.dtype(yt.dtype).itemsize, jnp.dtype(yp.dtype).itemsize)
        tn = _pick_lane_tile(N, C, itemsize)
    assert N % tn == 0
    nt = N // tn

    in_specs = [
        pl.BlockSpec((1, C, tn), lambda b, n: (b, 0, n)),
        pl.BlockSpec((1, C, tn), lambda b, n: (b, 0, n)),
        pl.BlockSpec((1, 1, tn), lambda b, n: (b, 0, n)),
    ]

    if top_k_percent_pixels == 1.0:
        # Default path: no per-pixel HBM writeback, only per-batch partial sums.
        kernel = functools.partial(_mse_sum_kernel,
                                   ignore_label=ignore_label, inv_c=1.0 / C)
        psum = pl.pallas_call(
            kernel,
            out_shape=jax.ShapeDtypeStruct((B, 1, 1), jnp.float32),
            grid_spec=pltpu.PrefetchScalarGridSpec(
                num_scalar_prefetch=0,
                grid=(B, nt),
                in_specs=in_specs,
                out_specs=pl.BlockSpec((1, 1, 1), lambda b, n: (b, 0, 0)),
                scratch_shapes=[pltpu.VMEM((1, 1), jnp.float32)],
            ),
            compiler_params=pltpu.CompilerParams(
                dimension_semantics=("parallel", "arbitrary")),
        )(yt, yp, w)
        return jnp.sum(psum) * (float(weight) / float(B * N))

    # Top-k path: kernel produces per-pixel weighted losses; selection in JAX.
    kernel = functools.partial(_mse_pixel_kernel,
                               ignore_label=ignore_label, inv_c=1.0 / C)
    pix = pl.pallas_call(
        kernel,
        out_shape=jax.ShapeDtypeStruct((B, 1, N), jnp.float32),
        grid_spec=pltpu.PrefetchScalarGridSpec(
            num_scalar_prefetch=0,
            grid=(B, nt),
            in_specs=in_specs,
            out_specs=pl.BlockSpec((1, 1, tn), lambda b, n: (b, 0, n)),
        ),
        compiler_params=pltpu.CompilerParams(
            dimension_semantics=("parallel", "parallel")),
    )(yt, yp, w)

    # TODO(synk): per-sample top-k selection stays in plain JAX (lax.top_k);
    # sort/selection has no clean Pallas TPU primitive.
    k = int(round(top_k_percent_pixels * N))
    topk_vals = jax.lax.top_k(pix.reshape(B, N), k)[0]
    return jnp.mean(topk_vals) * weight


def _reference_loss(y_true, y_pred, weights, *, ignore_label,
                    top_k_percent_pixels, weight):
    """Pure-JAX reference mirroring the PyTorch MSELoss.forward."""
    yt = jnp.asarray(y_true, jnp.float32)
    yp = jnp.asarray(y_pred, jnp.float32)
    w = jnp.asarray(weights, jnp.float32)
    if ignore_label is not None:
        yp = jnp.where(yt == jnp.float32(ignore_label), jnp.float32(ignore_label), yp)
    sq = jnp.square(yt - yp)
    per_pixel = jnp.mean(sq, axis=1, keepdims=True) if yp.ndim == 4 else sq
    per_pixel = per_pixel * w
    B = per_pixel.shape[0]
    flat = per_pixel.reshape(B, -1)
    if top_k_percent_pixels != 1.0:
        k = int(round(top_k_percent_pixels * flat.shape[1]))
        flat = jax.lax.top_k(flat, k)[0]
    return jnp.mean(flat) * weight


if __name__ == "__main__":
    B, C, H, W = 2, 4, 16, 16
    IGNORE = -1.0
    LOSS_WEIGHT = 2.0

    key = jax.random.PRNGKey(0)
    k_true, k_pred, k_ign, k_w = jax.random.split(key, 4)

    y_true = jax.random.normal(k_true, (B, C, H, W), dtype=jnp.float32)
    y_pred = jax.random.normal(k_pred, (B, C, H, W), dtype=jnp.float32)
    # Sprinkle some ignore_label elements into the ground truth.
    ignore_mask = jax.random.uniform(k_ign, (B, C, H, W)) < 0.1
    y_true = jnp.where(ignore_mask, jnp.float32(IGNORE), y_true)
    weights = jax.random.uniform(k_w, (B, 1, H, W), dtype=jnp.float32,
                                 minval=0.5, maxval=1.5)

    # 1) Default path: top_k = 1.0 (plain weighted mean), with ignore_label.
    out = mse_topk_loss(y_true, y_pred, weights, ignore_label=IGNORE,
                        top_k_percent_pixels=1.0, weight=LOSS_WEIGHT)
    out = jax.block_until_ready(out)
    ref = _reference_loss(y_true, y_pred, weights, ignore_label=IGNORE,
                          top_k_percent_pixels=1.0, weight=LOSS_WEIGHT)
    np.testing.assert_allclose(np.asarray(out), np.asarray(ref),
                               rtol=1e-4, atol=1e-5)

    # 2) Top-k path: top 50% pixels per sample.
    out_tk = mse_topk_loss(y_true, y_pred, weights, ignore_label=IGNORE,
                           top_k_percent_pixels=0.5, weight=LOSS_WEIGHT)
    out_tk = jax.block_until_ready(out_tk)
    ref_tk = _reference_loss(y_true, y_pred, weights, ignore_label=IGNORE,
                             top_k_percent_pixels=0.5, weight=LOSS_WEIGHT)
    np.testing.assert_allclose(np.asarray(out_tk), np.asarray(ref_tk),
                               rtol=1e-4, atol=1e-5)

    # 3) Module-default config: ignore_label=None, top_k=1.0, weight=1.0.
    out_def = mse_topk_loss(y_true, y_pred, weights)
    out_def = jax.block_until_ready(out_def)
    ref_def = _reference_loss(y_true, y_pred, weights, ignore_label=None,
                              top_k_percent_pixels=1.0, weight=1.0)
    np.testing.assert_allclose(np.asarray(out_def), np.asarray(ref_def),
                               rtol=1e-4, atol=1e-5)

    print("KERNEL_OK")
</pallas_src>

<mosaic_0001>
module attributes {stable_mosaic.version = 11 : i64} {
  func.func @_mse_sum_kernel(%arg0: i32, %arg1: i32, %arg2: memref<1x4x256xf32, #tpu.memory_space<vmem>>, %arg3: memref<1x4x256xf32, #tpu.memory_space<vmem>>, %arg4: memref<1x1x256xf32, #tpu.memory_space<vmem>>, %arg5: memref<1x1x1xf32, #tpu.memory_space<vmem>>, %arg6: memref<1x1xf32, #tpu.memory_space<vmem>>) attributes {dimension_semantics = [#tpu.dimension_semantics<parallel>, #tpu.dimension_semantics<arbitrary>], iteration_bounds = array<i64: 2, 1>, scalar_prefetch = 0 : i64, scratch_operands = 1 : i64, tpu.core_type = #tpu.core_type<tc>, window_params = [{transform_indices = @transform_0, window_bounds = array<i64: 1, 4, 256>}, {transform_indices = @transform_1, window_bounds = array<i64: 1, 4, 256>}, {transform_indices = @transform_2, window_bounds = array<i64: 1, 1, 256>}, {transform_indices = @transform_3, window_bounds = array<i64: 1, 1, 1>}]} {
    %c0_i32 = arith.constant 0 : i32
    %0 = arith.cmpi eq, %arg1, %c0_i32 : i32
    %1 = arith.extui %0 : i1 to i32
    %c0_i32_0 = arith.constant 0 : i32
    %2 = arith.cmpi ne, %1, %c0_i32_0 : i32
    scf.if %2 {
      %cst_19 = arith.constant 0.000000e+00 : f32
      %31 = vector.broadcast %cst_19 : f32 to vector<1x1xf32>
      %c0_20 = arith.constant 0 : index
      %c0_21 = arith.constant 0 : index
      %32 = vector.load %arg6[%c0_20, %c0_21] : memref<1x1xf32, #tpu.memory_space<vmem>>, vector<1x1xf32>
      tpu.vector_store %arg6[%c0_20, %c0_21], %31 {strides = array<i32>} : memref<1x1xf32, #tpu.memory_space<vmem>>, vector<1x1xf32>,
    } else {
    }
    %c0 = arith.constant 0 : index
    %c0_1 = arith.constant 0 : index
    %c0_2 = arith.constant 0 : index
    %3 = vector.load %arg2[%c0, %c0_1, %c0_2] : memref<1x4x256xf32, #tpu.memory_space<vmem>>, vector<1x4x256xf32>
    %4 = vector.shape_cast %3 : vector<1x4x256xf32> to vector<4x256xf32>
    %c0_3 = arith.constant 0 : index
    %c0_4 = arith.constant 0 : index
    %c0_5 = arith.constant 0 : index
    %5 = vector.load %arg3[%c0_3, %c0_4, %c0_5] : memref<1x4x256xf32, #tpu.memory_space<vmem>>, vector<1x4x256xf32>
    %6 = vector.shape_cast %5 : vector<1x4x256xf32> to vector<4x256xf32>
    %c0_6 = arith.constant 0 : index
    %c0_7 = arith.constant 0 : index
    %c0_8 = arith.constant 0 : index
    %7 = vector.load %arg4[%c0_6, %c0_7, %c0_8] : memref<1x1x256xf32, #tpu.memory_space<vmem>>, vector<1x1x256xf32>
    %8 = vector.shape_cast %7 : vector<1x1x256xf32> to vector<1x256xf32>
    %9 = arith.subf %4, %6 : vector<4x256xf32>
    %10 = arith.mulf %9, %9 : vector<4x256xf32>
    %cst = arith.constant -1.000000e+00 : f32
    %11 = vector.broadcast %cst : f32 to vector<4x256xf32>
    %12 = arith.cmpf oeq, %4, %11 : vector<4x256xf32>
    %cst_9 = arith.constant 0.000000e+00 : f32
    %13 = vector.broadcast %cst_9 : f32 to vector<4x256xf32>
    %14 = arith.select %12, %13, %10 : vector<4x256xi1>, vector<4x256xf32>
    %cst_10 = arith.constant dense<0.000000e+00> : vector<256xf32>
    %15 = vector.multi_reduction <add>, %14, %cst_10 [0] : vector<4x256xf32> to vector<256xf32>
    %16 = vector.shape_cast %15 : vector<256xf32> to vector<1x256xf32>
    %cst_11 = arith.constant 2.500000e-01 : f32
    %17 = vector.broadcast %cst_11 : f32 to vector<1x256xf32>
    %18 = arith.mulf %16, %17 : vector<1x256xf32>
    %19 = arith.mulf %18, %8 : vector<1x256xf32>
    %c0_12 = arith.constant 0 : index
    %c0_13 = arith.constant 0 : index
    %20 = vector.load %arg6[%c0_12, %c0_13] : memref<1x1xf32, #tpu.memory_space<vmem>>, vector<1x1xf32>
    %21 = vector.shape_cast %19 : vector<1x256xf32> to vector<1x1x256xf32>
    %cst_14 = arith.constant dense<0.000000e+00> : vector<1xf32>
    %22 = vector.multi_reduction <add>, %21, %cst_14 [1, 2] : vector<1x1x256xf32> to vector<1xf32>
    %23 = vector.shape_cast %22 : vector<1xf32> to vector<1x1x1xf32>
    %24 = vector.extract %23[0, 0, 0] : f32 from vector<1x1x1xf32>
    %25 = vector.broadcast %24 : f32 to vector<1x1xf32>
    %26 = arith.addf %20, %25 : vector<1x1xf32>
    %c0_15 = arith.constant 0 : index
    %c0_16 = arith.constant 0 : index
    %27 = vector.load %arg6[%c0_15, %c0_16] : memref<1x1xf32, #tpu.memory_space<vmem>>, vector<1x1xf32>
    tpu.vector_store %arg6[%c0_15, %c0_16], %26 {strides = array<i32>} : memref<1x1xf32, #tpu.memory_space<vmem>>, vector<1x1xf32>,
    %c0_i32_17 = arith.constant 0 : i32
    %28 = arith.cmpi eq, %arg1, %c0_i32_17 : i32
    %29 = arith.extui %28 : i1 to i32
    %c0_i32_18 = arith.constant 0 : i32
    %30 = arith.cmpi ne, %29, %c0_i32_18 : i32
    scf.if %30 {
      %c0_19 = arith.constant 0 : index
      %c0_20 = arith.constant 0 : index
      %31 = vector.load %arg6[%c0_19, %c0_20] : memref<1x1xf32, #tpu.memory_space<vmem>>, vector<1x1xf32>
      %c0_21 = arith.constant 0 : index
      %c0_22 = arith.constant 0 : index
      %c0_23 = arith.constant 0 : index
      %32 = vector.load %arg5[%c0_21, %c0_22, %c0_23] : memref<1x1x1xf32, #tpu.memory_space<vmem>>, vector<1x1x1xf32>
      %33 = vector.shape_cast %32 : vector<1x1x1xf32> to vector<1x1xf32>
      %34 = vector.shape_cast %31 : vector<1x1xf32> to vector<1x1x1xf32>
      tpu.vector_store %arg5[%c0_21, %c0_22, %c0_23], %34 {strides = array<i32>} : memref<1x1x1xf32, #tpu.memory_space<vmem>>, vector<1x1x1xf32>,
    } else {
    }
    return
  }
  func.func @transform_0(%arg0: i32, %arg1: i32) -> (i32, i32, i32) {
    %c0_i32 = arith.constant 0 : i32
    %c0_i32_0 = arith.constant 0 : i32
    return %arg0, %c0_i32, %arg1 : i32, i32, i32
  }
  func.func @transform_1(%arg0: i32, %arg1: i32) -> (i32, i32, i32) {
    %c0_i32 = arith.constant 0 : i32
    %c0_i32_0 = arith.constant 0 : i32
    return %arg0, %c0_i32, %arg1 : i32, i32, i32
  }
  func.func @transform_2(%arg0: i32, %arg1: i32) -> (i32, i32, i32) {
    %c0_i32 = arith.constant 0 : i32
    %c0_i32_0 = arith.constant 0 : i32
    return %arg0, %c0_i32, %arg1 : i32, i32, i32
  }
  func.func @transform_3(%arg0: i32, %arg1: i32) -> (i32, i32, i32) {
    %c0_i32 = arith.constant 0 : i32
    %c0_i32_0 = arith.constant 0 : i32
    %c0_i32_1 = arith.constant 0 : i32
    return %arg0, %c0_i32, %c0_i32_0 : i32, i32, i32
  }
}

</mosaic_0001>

<bundles_post_ra>
// kernel: tpu_custom_call.1
= control target key start
LH: loop header
LB: loop body
LE: loop exit
PB: predicated region body
PF: predicated region fallthrough
CT: control target
= control target key end

     0   :  { %s851_s0 = inlined_call_operand.hbm [shape: f32[2,4,256], index: 0, kind: input, shape index: {}]   ;;  %s852_s1 = inlined_call_operand.hbm [shape: f32[2,4,256], index: 1, kind: input, shape index: {}]   ;;  %s853_s2 = inlined_call_operand.hbm [shape: f32[2,1,256], index: 2, kind: input, shape index: {}]   ;;  %s854_s3 = inlined_call_operand.vmem [shape: f32[2,1,1], index: 3, kind: output, shape index: {}]  }
   0x1   :  { %857 = sst [smem:[#allocation11_spill]] %s852_s1 }
   0x2   :  { %8 = vsyncpa [#allocation4], 0 }
   0x3   :  { %10 = vsyncpa [#allocation4 + $0x1], 0 }
   0x4   :  { %11 = vsyncpa [#allocation6], 0 }
   0x5   :  { %13 = vsyncpa [#allocation6 + $0x1], 0  ;;  %s729_s12 = smov 0   ;;  %s731_s13 = smov 0  }
   0x6   :  { %s733_s14 = smov 0   ;;  %s735_s15 = smov 0  }
   0x7   :  { %s737_s16 = smov 0   ;;  %s739_s17 = smov 0  }
   0x8 LB: > { %s855_s18 = sadd.s32 4294967295, %s706_s17   ;;  %s31_s19 = sadd.s32 1, %s702_s16  ;;  %s706_s17 = sphi %s739_s17, %s19_s17   ;;  %s702_s16 = sphi %s737_s16, %s869_s16   ;;  %s698_s15 = sphi %s735_s15, %s868_s15   ;;  %s694_s14 = sphi %s733_s14, %s867_s14   ;;  %s690_s13 = sphi %s731_s13, %s866_s13   ;;  %s686_s12 = sphi %s729_s12, %s865_s12  }
   0x9   : > { %p33_p0 = scmp.ge.s32.totalorder %s31_s19, 2  ;;  %s40_s20 = sadd.s32 1, %s694_s14 }
   0xa   : > { %p47_p1 = scmp.ne.s32.totalorder %s694_s14, %s690_s13  ;;  %p48_p2 = scmp.eq.s32.totalorder %s706_s17, 0 }
   0xb   : > { %s871_s19 = smov (%p33_p0, %s31_s19), 0  ;;  %p53_p4 = scmp.ne.s32.totalorder %s690_s13, %s686_s12 }
   0xc   : > { %858 = sst [smem:[#allocation10_spill]] %s871_s19  ;;  %p49_p3 = por %p48_p2, %p47_p1 }
   0xd   : > { %s35_s21 = ssub.s32 %s702_s16, %s871_s19  ;;  %p54_p5 = scmp.eq.s32.totalorder %s855_s18, 0 }
   0xe   : > { %p38_p6 = scmp.eq.s32.totalorder %s35_s21, 0  ;;  %p512_p8 = scmp.lt.s32.totalorder %s706_s17, 2 }
   0xf   : > { %p770_p7 = por %p54_p5, %p53_p4  ;;  %s159_s24 = sand.u32 1, %s694_s14  }
  0x10   : > { %s776_s23 = scalar_select %p38_p6, %s694_s14, %s40_s20  }
  0x11   : > { %s492_s25 = sshll.u32 %s702_s16, 3  ;;  %s478_s26 = sshll.u32 %s159_s24, 3 }
  0x12   : > { %p780_p9 = pnand %p512_p8, %p49_p3  ;;  %s181_s28 = sand.u32 1, %s706_s17  }
  0x13   : > { %s861_s1 = sld [smem:[#allocation11_spill]]  ;;  %s185_s5 = scalar_lea.vmem [#allocation5], %s478_s26 }
  0x14   : > { %s196_s6 = sshll.u32 %s185_s5, 4  ;;  %p486_p10 = scmp.ge.s32.totalorder %s706_s17, 1  ;;  %s197_s6 = int_to_ptr.vmem [resolvable:$true] %s196_s6 }
  0x15   : > { %s182_s8 = scalar_lea.sflag [#allocation6], %s181_s28  ;;  %p222_p11 = scmp.lt.s32.totalorder %s706_s17, 3 }
  0x16   : > { %s170_s12 = scalar_lea.hbm %s851_s0, %s492_s25  ;;  %s163_s20 = scalar_lea.vmem [#allocation3], %s478_s26 }
  0x17   : > { %p792_p12 = pnand %p486_p10, %p222_p11  ;;  %s174_s21 = sshll.u32 %s163_s20, 4  ;;  %s175_s21 = int_to_ptr.vmem [resolvable:$true] %s174_s21 }
  0x18   : > { %s172_s29 = sshll.u32 %s170_s12, 4  ;;  %s484_s30 = sshll.u32 %s159_s24, 1  ;;  %s173_s29 = int_to_ptr.hbm [resolvable:$true] %s172_s29 }
  0x19   : > { %s192_s4 = scalar_lea.hbm %s861_s1, %s492_s25  ;;  %s485_s28 = sshll.u32 %s702_s16, 1 }
  0x1a   : > { %s194_s7 = sshll.u32 %s192_s4, 4  ;;  %s160_s4 = scalar_lea.sflag [#allocation4], %s159_s24  ;;  %s195_s7 = int_to_ptr.hbm [resolvable:$true] %s194_s7 }
  0x1b   : > { %508 = dma.hbm_to_vmem [thread:$0]  (!%p780_p9), %s195_s7, 128, %s197_s6, %s182_s8  }
  0x1c   : > { %505 = dma.hbm_to_vmem [thread:$0]  (!%p780_p9), %s173_s29, 128, %s175_s21, %s160_s4  }
  0x1d   : > { %s213_s7 = scalar_lea.hbm %s853_s2, %s485_s28  ;;  %s207_s18 = scalar_lea.vmem [#allocation7], %s484_s30 }
  0x1e   : > { %s217_s1 = sshll.u32 %s207_s18, 4  ;;  %s215_s19 = sshll.u32 %s213_s7, 4  ;;  %s218_s1 = int_to_ptr.vmem [resolvable:$true] %s217_s1  ;;  %s216_s19 = int_to_ptr.hbm [resolvable:$true] %s215_s19 }
  0x1f   : > { %511 = dma.hbm_to_vmem [thread:$0]  (!%p780_p9), %s216_s19, 32, %s218_s1, %s182_s8  }
  0x20   : > { %226 = sbr.rel (%p792_p12) target bundleno = 266 (0x10a), region = 32  ;;  %s810_s24 = sand.u32 (!%p792_p12), 1, %s690_s13  }
  0x21   : > { %s487_s25 = sshll.u32 (!%p792_p12), %s810_s24, 3  ;;  %s229_s26 = scalar_lea.sflag (!%p792_p12), [#allocation4], %s810_s24 }
  0x22   : > { %s232_s10 = scalar_lea.vmem (!%p792_p12), [#allocation3], %s487_s25 }
  0x25   : > { %677 = dma.done.wait (%p770_p7), %s229_s26, 128  }
  0x26   : > { %679 = vsyncadd (%p770_p7), %s229_s26, 4294967168  ;;  %s863_s18 = sadd.s32 4294967295, %s706_s17   ;;  %s242_s27 = scalar_lea.vmem [#allocation5], %s487_s25 }
  0x27   : > { %s238_s1 = sand.u32 1, %s863_s18  }
  0x28   : > { %s239_s19 = scalar_lea.sflag [#allocation6], %s238_s1 }
  0x29   : > { %681 = dma.done.wait (%p770_p7), %s239_s19, 160  }
  0x2a   : > { %683 = vsyncadd (%p770_p7), %s239_s19, 4294967136  ;;  %v296_v0 = vld [vmem:[%s232_s10] sm:$0xff]  ;;  %v297_v1 = vld [vmem:[%s242_s27] sm:$0xff]  ;;  %vm309_vm1 = vcmask 1043456   ;;  %s489_s8 = sshll.u32 %s810_s24, 1  ;;  %vm334_vm2 = vcmask 1040384  }
  0x2b   : > { %v299_v2 = vsub.f32 %v296_v0, %v297_v1  ;;  %vm301_vm0 = vcmp.eq.f32.partialorder %v296_v0, -1.0  ;;  %s252_s22 = scalar_lea.vmem [#allocation7], %s489_s8  ;;  %vm294_vm3 = vcmask 0   ;;  %v708_v31 = vmov 0.0   ;;  %p287_p13 = scmp.lt.s32.totalorder %s698_s15, 1 }
  0x2c   : > { %v298_v17 = vld [vmem:[%s252_s22] sm:$0x3]  ;;  %295 = vst.msk [vmem:[#allocation2] sm:$0x1] %vm294_vm3, %v708_v31 }
  0x2d   : > { %v300_v3 = vmul.f32 %v299_v2, %v299_v2  ;;  %v327_v22 = vperm.slane %v298_v17, 0  ;;  %v328_v23 = vperm.slane %v298_v17, 1  ;;  %s873_s15 = smov (!%p287_p13, %s698_s15), 1 }
  0x2e   : > { %s289_s20 = scalar_lea.vmem %s854_s3, %s873_s15 }
  0x2f   : > { %v302_v4 = vsel %vm301_vm0, 0.0, %v300_v3 }
  0x30   : > { %304 = vst [vmem:[#allocation1] ss:$2 sm:$0xff] %v302_v4 }
  0x33   : > { %v333_v39 = vld [vmem:[#allocation2] sm:$0x1] }
  0x37   : > { %v305_v5 = vld.sshfl [vmem:[#allocation1] sm:$0xff pattern:$0x75316420]  ;;  %v306_v6 = vld.sshfl [vmem:[#allocation1 + $0x8] sm:$0xff pattern:$0x75316420] }
  0x38   : > { %v310_v7 = vsel %vm309_vm1, %v305_v5, 0.0  ;;  %v317_v8 = vsel %vm309_vm1, %v306_v6, 0.0 }
  0x39   : > { %v311_v9 = vrot.slane %v310_v7, 4  ;;  %v318_v10 = vrot.slane %v317_v8, 4 }
  0x3b   : > { %v312_v11 = vadd.f32 %v311_v9, %v310_v7  ;;  %v319_v12 = vadd.f32 %v318_v10, %v317_v8 }
  0x3d   : > { %v313_v13 = vrot.slane %v312_v11, 2  ;;  %v320_v14 = vrot.slane %v319_v12, 2 }
  0x3f   : > { %v314_v15 = vadd.f32 %v313_v13, %v312_v11  ;;  %v321_v16 = vadd.f32 %v320_v14, %v319_v12 }
  0x41   : > { %v315_v18 = vrot.slane %v314_v15, 1  ;;  %v322_v19 = vrot.slane %v321_v16, 1 }
  0x43   : > { %v316_v20 = vadd.f32 %v315_v18, %v314_v15  ;;  %v323_v21 = vadd.f32 %v322_v19, %v321_v16 }
  0x45   : > { %v324_v24 = vmul.f32 0.25, %v316_v20  ;;  %v325_v25 = vmul.f32 0.25, %v323_v21 }
  0x47   : > { %v331_v26 = vmul.f32 %v327_v22, %v324_v24  ;;  %v332_v27 = vmul.f32 %v328_v23, %v325_v25 }
  0x49   : > { %v335_v28 = vsel %vm334_vm2, %v331_v26, 0.0  ;;  %v336_v29 = vsel %vm334_vm2, %v332_v27, 0.0 }
  0x4a   : > { %v337_v30 = vadd.f32 %v336_v29, %v335_v28 }
  0x4c   : > { %338 = vadd.xlane.f32.xlu0 %v337_v30 }
  0xbf   : > { %v339_v32 = vpop.xlane.xlu0 %338 }
  0xc0   : > { %v340_v33 = vrot.slane %v339_v32, 4 }
  0xc2   : > { %v341_v34 = vadd.f32 %v340_v33, %v339_v32 }
  0xc4   : > { %v342_v35 = vrot.slane %v341_v34, 2 }
  0xc6   : > { %v343_v36 = vadd.f32 %v342_v35, %v341_v34 }
  0xc8   : > { %v344_v37 = vrot.slane %v343_v36, 1 }
  0xca   : > { %v345_v38 = vadd.f32 %v344_v37, %v343_v36 }
  0xcc   : > { %494 = vpush %v345_v38 }
  0xfd   : > { %s495_s9 = spop %494 }
  0xfe   : > { %v347_v40 = vstv %s495_s9 }
  0xff   : > { %v348_v41 = vadd.f32 %v347_v40, %v333_v39 }
 0x101   : > { %350 = vst.msk [vmem:[#allocation2] sm:$0x1] %vm294_vm3, %v348_v41 }
 0x108   : > { %v354_v42 = vld [vmem:[#allocation2] sm:$0x1] }
 0x109   : > { %355 = vst.msk [vmem:[%s289_s20] sm:$0x1] %vm294_vm3, %v354_v42 }
 0x10a PF: > { %s19_s17 = sadd.s32 1, %s706_s17   ;;  %s864_s21 = sld [smem:[#allocation10_spill]] }
 0x10b   : > { %p16_p0 = scmp.ge.s32.totalorder %s19_s17, 4   ;;  %s865_s12 = smov %s690_s13 }
 0x10c   : > { %s866_s13 = smov %s694_s14  ;;  %s867_s14 = smov %s776_s23 }
 0x10d   : > { %s868_s15 = smov %s702_s16  ;;  %18 = sbr.rel (!%p16_p0) target bundleno = 8 (0x8), region = 104 }
 0x110   : > { %s869_s16 = smov %s864_s21 }
 0x112   :  { %373 = vsyncpa [#allocation4], 1 }
 0x113   :  { %375 = vsyncpa [#allocation4 + $0x1], 1 }
 0x114   :  { %376 = vsyncpa [#allocation6], 1 }
 0x115   :  { %378 = vsyncpa [#allocation6 + $0x1], 1 }

</bundles_post_ra>
